<compile_context>
chip_gen: v5e
topology: v5e:2x2
jax: 0.10.0
libtpu: 0.0.40
codegen_flags: <defaults>
</compile_context>

<pallas_src>
import functools

import numpy as np
import jax
import jax.numpy as jnp
from jax.experimental import pallas as pl
from jax.experimental.pallas import tpu as pltpu


# ============================================================================
# Kernel 1: Conv2d(1,16,(1,51),pad 25) + BN + ReLU + MaxPool2d((1,4)) fused
# ============================================================================
def _conv1_pool_kernel(x_ref, t_ref, b_ref, o_ref):
    # (B*H, W) @ (W, 4*W4*C1): one MXU matmul does all 51 taps (bf16 operands).
    y = jnp.dot(x_ref[...].astype(jnp.bfloat16), t_ref[...],
                preferred_element_type=jnp.float32)
    y = jnp.maximum(y + b_ref[...], 0.0)
    n = o_ref.shape[1]                      # 4 lane slices of width n = W4*C1
    o_ref[...] = jnp.maximum(jnp.maximum(y[:, 0:n], y[:, n:2 * n]),
                             jnp.maximum(y[:, 2 * n:3 * n], y[:, 3 * n:4 * n]))


def conv1_bn_relu_pool(x2d, T, bcol):
    M, K = x2d.shape
    N = T.shape[1]
    No = N // 4
    return pl.pallas_call(
        _conv1_pool_kernel,
        out_shape=jax.ShapeDtypeStruct((M, No), jnp.float32),
        grid=(1,),
        in_specs=[pl.BlockSpec((M, K), lambda i: (0, 0)),
                  pl.BlockSpec((K, N), lambda i: (0, 0)),
                  pl.BlockSpec((1, N), lambda i: (0, 0))],
        out_specs=pl.BlockSpec((M, No), lambda i: (0, 0)),
        compiler_params=pltpu.CompilerParams(
            dimension_semantics=("arbitrary",),
            vmem_limit_bytes=32 * 1024 * 1024),
    )(x2d, T, bcol)


# ============================================================================
# Kernel 2: 4 InvertedResidual blocks + avg-pool + classifier, fused per batch
# ============================================================================
def _shift2d(t, dh, dw):
    """s[h, w, :] = t[h+dh, w+dw, :], zero outside (3x3 depthwise halo)."""
    H, W, C = t.shape
    if dh == 1:
        t = jnp.concatenate([t[1:], jnp.zeros((1, W, C), t.dtype)], axis=0)
    elif dh == -1:
        t = jnp.concatenate([jnp.zeros((1, W, C), t.dtype), t[:-1]], axis=0)
    if dw == 1:
        t = jnp.concatenate([t[:, 1:], jnp.zeros((H, 1, C), t.dtype)], axis=1)
    elif dw == -1:
        t = jnp.concatenate([jnp.zeros((H, 1, C), t.dtype), t[:, :-1]], axis=1)
    return t


def _inv_res_block(x2, hs, ws, we, be, wd, bd, wp, bp, stride, use_res, sel):
    """One InvertedResidual block on a (hs*ws, Cin) f32 activation (rows=(h,w))."""
    chid = we.shape[1]
    # expand 1x1 conv + folded BN + ReLU (MXU, bf16 operands, f32 accumulate)
    e2 = jnp.dot(x2.astype(jnp.bfloat16), we,
                 preferred_element_type=jnp.float32) + be
    e2 = jnp.maximum(e2, 0.0)
    e3 = e2.reshape(hs, ws, chid)
    # depthwise 3x3 (pad 1) + folded BN + ReLU: 9 shifted taps, halo-free (VPU)
    acc = e3 * wd[1, 1][None, None, :]
    for ki in range(3):
        for kj in range(3):
            if ki == 1 and kj == 1:
                continue
            acc = acc + _shift2d(e3, ki - 1, kj - 1) * wd[ki, kj][None, None, :]
    d3 = jnp.maximum(acc + bd[None, :, :], 0.0)
    d2 = d3.reshape(hs * ws, chid)
    if stride == 2:
        # In-kernel stride-2: a 0/1 selection matmul picks rows (2h, 2w) before
        # the projection (4x smaller project matmul, no host-side ::2 slice).
        d2 = jnp.dot(sel, d2.astype(jnp.bfloat16),
                     preferred_element_type=jnp.float32)
        hs, ws = hs // 2, ws // 2
    # project 1x1 conv + folded BN (+ residual) (MXU)
    p2 = jnp.dot(d2.astype(jnp.bfloat16), wp,
                 preferred_element_type=jnp.float32) + bp
    if use_res:
        p2 = p2 + x2
    return p2, hs, ws


def _net_kernel(x_ref, *refs, block_cfg):
    o_ref = refs[-1]
    w = refs[:-1]
    _, H, W4, C0 = x_ref.shape
    cur = x_ref[0].reshape(H * W4, C0)          # (S, C) f32, rows = (h, w4)
    hs, ws = H, W4
    sel = w[24][...]
    idx = 0
    for (stride, use_res) in block_cfg:
        we_r, be_r, wd_r, bd_r, wp_r, bp_r = w[idx:idx + 6]
        idx += 6
        cur, hs, ws = _inv_res_block(
            cur, hs, ws, we_r[...], be_r[...], wd_r[...], bd_r[...],
            wp_r[...], bp_r[...], stride, use_res,
            sel if stride == 2 else None)
    w1_r, b1_r, w2_r, b2_r = w[25:29]
    # AdaptiveAvgPool2d((hs,1)) (identity along H for H=16 inputs) + NCHW
    # flatten + Linear+BN1d folded: accumulate per-h row means against the
    # (hs, C, 32) fc1 weight (W-mean is done here, not folded into fc1).
    out1 = b1_r[...]
    inv_w = 1.0 / float(ws)
    for h in range(hs):
        rmean = jnp.sum(cur[h * ws:(h + 1) * ws, :], axis=0, keepdims=True) * inv_w
        out1 = out1 + jnp.dot(rmean.astype(jnp.bfloat16), w1_r[h],
                              preferred_element_type=jnp.float32)
    out1 = jnp.maximum(out1, 0.0)
    out = jnp.dot(out1.astype(jnp.bfloat16), w2_r[...],
                  preferred_element_type=jnp.float32) + b2_r[...]
    o_ref[0] = out


def _const_map(b, *, n):
    return (0,) * n


def blocks_and_tail(a, params):
    B, H, W4, C0 = a.shape
    weights = []
    for blk in params["blocks"]:
        weights += [blk["we"], blk["be"], blk["wd"], blk["bd"], blk["wp"], blk["bp"]]
    weights += [params["stride2_sel"],
                params["fc1_w"], params["fc1_b"], params["fc2_w"], params["fc2_b"]]
    out_dim = params["fc2_w"].shape[1]
    in_specs = [pl.BlockSpec((1, H, W4, C0), lambda b: (b, 0, 0, 0))]
    in_specs += [pl.BlockSpec(tuple(wt.shape), functools.partial(_const_map, n=wt.ndim))
                 for wt in weights]
    block_cfg = tuple((blk["stride"], blk["res"]) for blk in params["blocks"])
    kernel = functools.partial(_net_kernel, block_cfg=block_cfg)
    out = pl.pallas_call(
        kernel,
        out_shape=jax.ShapeDtypeStruct((B, 1, out_dim), jnp.float32),
        grid=(B,),
        in_specs=in_specs,
        out_specs=pl.BlockSpec((1, 1, out_dim), lambda b: (b, 0, 0)),
        compiler_params=pltpu.CompilerParams(
            dimension_semantics=("parallel",),          # v7x: one batch per TC
            vmem_limit_bytes=32 * 1024 * 1024),
    )(a, *weights)
    return out.reshape(B, out_dim)


# ============================================================================
# Parameters (deterministic synthetic init), BN folded, conv1 pre-Toeplitzed.
# ============================================================================
def _bn_fold(key, C, eps=1e-5):
    k1, k2, k3, k4 = jax.random.split(key, 4)
    gamma = jax.random.uniform(k1, (C,), jnp.float32, 0.8, 1.2)
    beta = 0.05 * jax.random.normal(k2, (C,), jnp.float32)
    mean = 0.05 * jax.random.normal(k3, (C,), jnp.float32)
    var = jax.random.uniform(k4, (C,), jnp.float32, 0.8, 1.2)
    s = gamma / jnp.sqrt(var + eps)
    return s, beta - mean * s            # BN(y) = y * s + (beta - mean * s)


def init_params(key, out_dim, H=16, W=128):
    keys = iter(jax.random.split(key, 64))
    nk = lambda: next(keys)
    params = {}

    # ---- features1: Conv2d(1,16,(1,51),pad=(0,25),bias) + BN2d(16) ----
    C1, KW, PAD = 16, 51, 25
    w = 0.1 * jax.random.normal(nk(), (KW, C1), jnp.float32)
    b = 0.1 * jax.random.normal(nk(), (C1,), jnp.float32)
    s, t = _bn_fold(nk(), C1)
    wf = np.asarray(w * s[None, :])
    bf = np.asarray(b * s + t)
    W4 = W // 4
    # Toeplitz weight: y[m, (k, w4, c)] = sum_q x[m, q] * T[q, (k, w4, c)]
    T = np.zeros((W, 4, W4, C1), np.float32)
    for wpos in range(W):
        k, w4 = wpos % 4, wpos // 4
        for q in range(max(0, wpos - PAD), min(W, wpos + PAD + 1)):
            T[q, k, w4, :] = wf[q - wpos + PAD, :]
    params["conv1_T"] = jnp.asarray(T.reshape(W, 4 * W4 * C1)).astype(jnp.bfloat16)
    params["conv1_bcol"] = jnp.asarray(np.tile(bf, 4 * W4).reshape(1, 4 * W4 * C1))

    # ---- InvertedResidual blocks: (inp, oup, stride, expand_ratio) ----
    cfg = [(16, 16, 1, 4), (16, 32, 2, 4), (32, 32, 1, 4), (32, 32, 1, 4)]
    blocks = []
    for (inp, oup, stride, er) in cfg:
        hid = inp * er
        we = (0.5 / np.sqrt(inp)) * jax.random.normal(nk(), (inp, hid), jnp.float32)
        s, t = _bn_fold(nk(), hid)
        we, be = (we * s[None, :]).astype(jnp.bfloat16), t
        wd = 0.3 * jax.random.normal(nk(), (3, 3, hid), jnp.float32)
        s, t = _bn_fold(nk(), hid)
        wd, bd = wd * s[None, None, :], t
        wp = (0.5 / np.sqrt(hid)) * jax.random.normal(nk(), (hid, oup), jnp.float32)
        s, t = _bn_fold(nk(), oup)
        wp, bp = (wp * s[None, :]).astype(jnp.bfloat16), t
        blocks.append(dict(we=we, be=be.reshape(1, hid),
                           wd=wd, bd=bd.reshape(1, hid),
                           wp=wp, bp=bp.reshape(1, oup),
                           stride=stride, res=(stride == 1 and inp == oup)))
    params["blocks"] = blocks

    # ---- stride-2 row-selection matrix: picks rows (2h, 2w) of the HxW4 grid
    Hs, Ws = H, W4
    Ho, Wo = Hs // 2, Ws // 2
    sel = np.zeros((Ho * Wo, Hs * Ws), np.float32)
    for ho in range(Ho):
        for wo in range(Wo):
            sel[ho * Wo + wo, (2 * ho) * Ws + 2 * wo] = 1.0
    params["stride2_sel"] = jnp.asarray(sel).astype(jnp.bfloat16)

    # ---- classifier: Linear(256,32)+BN1d(32)+ReLU, Linear(32,out_dim) ----
    Hf, Cf = H // 2, 32
    # fc1 stored as (Hf, Cf, 32): w1[h, c, j] == torch fc1.weight[j, c*Hf + h],
    # so the per-h accumulation in the kernel reproduces the NCHW flatten order.
    w1 = (1.0 / np.sqrt(Cf * Hf)) * jax.random.normal(nk(), (Hf, Cf, 32), jnp.float32)
    b1 = 0.1 * jax.random.normal(nk(), (32,), jnp.float32)
    s, t = _bn_fold(nk(), 32)
    params["fc1_w"] = (w1 * s[None, None, :]).astype(jnp.bfloat16)
    params["fc1_b"] = (b1 * s + t).reshape(1, 32)
    params["fc2_w"] = ((1.0 / np.sqrt(32.0)) *
                       jax.random.normal(nk(), (32, out_dim), jnp.float32)).astype(jnp.bfloat16)
    params["fc2_b"] = (0.1 * jax.random.normal(nk(), (out_dim,), jnp.float32)).reshape(1, out_dim)
    return params


# ============================================================================
# Forward pass (matches CNN2D_RESNET_V3_SMALL7.forward, inference mode)
# ============================================================================
def forward(params, x):
    # x: (B, H, W); PyTorch unsqueeze(1) gives NCHW (B,1,H,W); we keep NHWC.
    B, H, W = x.shape
    assert H == 16 and W % 8 == 0
    # TODO(synk): general AdaptiveAvgPool2d (feature H != 8) not implemented.
    y = conv1_bn_relu_pool(x.reshape(B * H, W), params["conv1_T"], params["conv1_bcol"])
    # (B*H, W4*16) row-major == (B, H, W4, 16) NHWC: metadata-only reshape.
    y = y.reshape(B, H, W // 4, 16)
    # All 4 InvertedResidual blocks + avg-pool + classifier in one fused kernel.
    return blocks_and_tail(y, params)


if __name__ == "__main__":
    key = jax.random.PRNGKey(0)
    kx, kp = jax.random.split(key)
    B, H, W = 2, 16, 128          # input to forward() before unsqueeze(1)
    OUT_DIM = 4
    x = jax.random.normal(kx, (B, H, W), jnp.float32)
    params = init_params(kp, OUT_DIM, H=H, W=W)

    out = forward(params, x)
    out = jax.block_until_ready(out)
    assert out.shape == (B, OUT_DIM), out.shape
    assert bool(jnp.all(jnp.isfinite(out)))
    print("KERNEL_OK")
</pallas_src>

<mosaic_0001>
module attributes {stable_mosaic.version = 11 : i64} {
  func.func @_conv1_pool_kernel(%arg0: i32, %arg1: memref<32x128xf32, #tpu.memory_space<vmem>>, %arg2: memref<128x2048xbf16, #tpu.memory_space<vmem>>, %arg3: memref<1x2048xf32, #tpu.memory_space<vmem>>, %arg4: memref<32x512xf32, #tpu.memory_space<vmem>>) attributes {dimension_semantics = [#tpu.dimension_semantics<arbitrary>], iteration_bounds = array<i64: 1>, scalar_prefetch = 0 : i64, scratch_operands = 0 : i64, tpu.core_type = #tpu.core_type<tc>, window_params = [{pipeline_mode = #tpu.pipeline_mode<synchronous>, transform_indices = @transform_0, window_bounds = array<i64: 32, 128>}, {pipeline_mode = #tpu.pipeline_mode<synchronous>, transform_indices = @transform_1, window_bounds = array<i64: 128, 2048>}, {pipeline_mode = #tpu.pipeline_mode<synchronous>, transform_indices = @transform_2, window_bounds = array<i64: 1, 2048>}, {pipeline_mode = #tpu.pipeline_mode<synchronous>, transform_indices = @transform_3, window_bounds = array<i64: 32, 512>}]} {
    %c0 = arith.constant 0 : index
    %c0_0 = arith.constant 0 : index
    %0 = vector.load %arg1[%c0, %c0_0] : memref<32x128xf32, #tpu.memory_space<vmem>>, vector<32x128xf32>
    %1 = arith.truncf %0 : vector<32x128xf32> to vector<32x128xbf16>
    %c0_1 = arith.constant 0 : index
    %c0_2 = arith.constant 0 : index
    %2 = vector.load %arg2[%c0_1, %c0_2] : memref<128x2048xbf16, #tpu.memory_space<vmem>>, vector<128x2048xbf16>
    %cst = arith.constant dense<0.000000e+00> : vector<32x2048xf32>
    %3 = tpu.matmul %1, %2, %cst {dimension_numbers = #tpu.dot_dimension_numbers<[1], [0], [0], [1], [0, 0, 1, 1], [], []>} : vector<32x128xbf16>, vector<128x2048xbf16>, vector<32x2048xf32> -> vector<32x2048xf32>
    %c0_3 = arith.constant 0 : index
    %c0_4 = arith.constant 0 : index
    %4 = vector.load %arg3[%c0_3, %c0_4] : memref<1x2048xf32, #tpu.memory_space<vmem>>, vector<1x2048xf32>
    %5 = vector.broadcast %4 : vector<1x2048xf32> to vector<32x2048xf32>
    %6 = arith.addf %3, %5 : vector<32x2048xf32>
    %cst_5 = arith.constant 0.000000e+00 : f32
    %7 = vector.broadcast %cst_5 : f32 to vector<32x2048xf32>
    %8 = arith.maximumf %6, %7 : vector<32x2048xf32>
    %9 = vector.extract_strided_slice %8 {offsets = [0, 0], sizes = [32, 512], strides = [1, 1]} : vector<32x2048xf32> to vector<32x512xf32>
    %10 = vector.extract_strided_slice %8 {offsets = [0, 512], sizes = [32, 512], strides = [1, 1]} : vector<32x2048xf32> to vector<32x512xf32>
    %11 = arith.maximumf %9, %10 : vector<32x512xf32>
    %12 = vector.extract_strided_slice %8 {offsets = [0, 1024], sizes = [32, 512], strides = [1, 1]} : vector<32x2048xf32> to vector<32x512xf32>
    %13 = vector.extract_strided_slice %8 {offsets = [0, 1536], sizes = [32, 512], strides = [1, 1]} : vector<32x2048xf32> to vector<32x512xf32>
    %14 = arith.maximumf %12, %13 : vector<32x512xf32>
    %15 = arith.maximumf %11, %14 : vector<32x512xf32>
    %c0_6 = arith.constant 0 : index
    %c0_7 = arith.constant 0 : index
    %16 = vector.load %arg4[%c0_6, %c0_7] : memref<32x512xf32, #tpu.memory_space<vmem>>, vector<32x512xf32>
    tpu.vector_store %arg4[%c0_6, %c0_7], %15 {strides = array<i32>} : memref<32x512xf32, #tpu.memory_space<vmem>>, vector<32x512xf32>,
    return
  }
  func.func @transform_0(%arg0: i32) -> (i32, i32) {
    %c0_i32 = arith.constant 0 : i32
    %c0_i32_0 = arith.constant 0 : i32
    %c0_i32_1 = arith.constant 0 : i32
    return %c0_i32, %c0_i32_0 : i32, i32
  }
  func.func @transform_1(%arg0: i32) -> (i32, i32) {
    %c0_i32 = arith.constant 0 : i32
    %c0_i32_0 = arith.constant 0 : i32
    %c0_i32_1 = arith.constant 0 : i32
    return %c0_i32, %c0_i32_0 : i32, i32
  }
  func.func @transform_2(%arg0: i32) -> (i32, i32) {
    %c0_i32 = arith.constant 0 : i32
    %c0_i32_0 = arith.constant 0 : i32
    %c0_i32_1 = arith.constant 0 : i32
    return %c0_i32, %c0_i32_0 : i32, i32
  }
  func.func @transform_3(%arg0: i32) -> (i32, i32) {
    %c0_i32 = arith.constant 0 : i32
    %c0_i32_0 = arith.constant 0 : i32
    %c0_i32_1 = arith.constant 0 : i32
    return %c0_i32, %c0_i32_0 : i32, i32
  }
}

</mosaic_0001>

<bundles_post_ra>
// kernel: tpu_custom_call.1
= control target key start
LH: loop header
LB: loop body
LE: loop exit
PB: predicated region body
PF: predicated region fallthrough
CT: control target
= control target key end

     0   :  { %8 = vsyncpa [#allocation3], 0  ;;  %s2335_s0 = inlined_call_operand.hbm [shape: f32[32,128], index: 0, kind: input, shape index: {}]   ;;  %s2336_s1 = inlined_call_operand.hbm [shape: bf16[128,2048], index: 1, kind: input, shape index: {}]   ;;  %s2337_s2 = inlined_call_operand.hbm [shape: f32[1,2048], index: 2, kind: input, shape index: {}]   ;;  %s2338_s3 = inlined_call_operand.hbm [shape: f32[32,512], index: 3, kind: output, shape index: {}]  }
   0x1   :  { %9 = vsyncpa [#allocation6], 0  ;;  %s28_s14 = sshll.u32 %s2336_s1, 4  ;;  %s29_s14 = int_to_ptr.hbm [resolvable:$true] %s28_s14 }
   0x2   :  { %10 = vsyncpa [#allocation4], 0  ;;  %s2074_s15 = smov [#allocation5]   ;;  %s15_s19 = sshll.u32 %s2335_s0, 4  ;;  %s16_s19 = int_to_ptr.hbm [resolvable:$true] %s15_s19 }
   0x3   :  { %s30_s16 = sshll.u32 %s2074_s15, 4  ;;  %s2075_s20 = smov 1024   ;;  %s31_s16 = int_to_ptr.vmem [resolvable:$true] %s30_s16 }
   0x4   :  { %s2076_s21 = smov 64   ;;  %s2077_s22 = smov [#allocation2]  }
   0x5   :  { %36 = dma.hbm_to_vmem [thread:$0]  %s29_s14, 16384, %s31_s16, [#allocation6], %s2075_s20, %s2075_s20, %s2076_s21  }
   0x6   :  { %s17_s23 = sshll.u32 %s2077_s22, 4  ;;  %s2078_s24 = smov 128   ;;  %s18_s23 = int_to_ptr.vmem [resolvable:$true] %s17_s23 }
   0x7   :  { %s2079_s25 = smov 8   ;;  %s42_s27 = sshll.u32 %s2337_s2, 4  ;;  %s43_s27 = int_to_ptr.hbm [resolvable:$true] %s42_s27 }
   0x8   :  { %23 = dma.hbm_to_vmem [thread:$0]  %s16_s19, 512, %s18_s23, [#allocation3], %s2078_s24, %s2078_s24, %s2079_s25  }
   0x9   :  { %s2080_s28 = smov [#allocation7]  }
   0xa   :  { %s44_s29 = sshll.u32 %s2080_s28, 4  ;;  %s45_s29 = int_to_ptr.vmem [resolvable:$true] %s44_s29 }
   0xb   :  { %47 = dma.hbm_to_vmem [thread:$0]  %s43_s27, 256, %s45_s29, [#allocation6]  }
   0xc   :  { %2068 = dma.done.wait [#allocation3], 512  }
   0xd   :  { %2069 = vsyncadd [#allocation3], 4294966784 }
   0xe   :  { %2070 = dma.done.wait [#allocation6], 16640  }
   0xf   :  { %2071 = vsyncadd [#allocation6], 4294950656  ;;  %v1772_v0 = vld [vmem:[#allocation5 + $0x380] sm:$0xf]  ;;  %v1946_v2 = vld [vmem:[#allocation5 + $0x384] sm:$0xf] }
  0x10   :  { %v1954_v1 = vld [vmem:[#allocation5 + $0x3bc] sm:$0xf0]  ;;  %v1774_v4 = vld [vmem:[#allocation5 + $0x3c0] sm:$0xf0]  ;;  %v1780_v5 = vld [vmem:[#allocation5 + $0x388] sm:$0xf] }
  0x11   :  { %v1773_v3 = vor.u32 %v1954_v1, %v1772_v0  ;;  %v1955_v6 = vld [vmem:[#allocation5 + $0x3c4] sm:$0xf0]  ;;  %v1777_v7 = vor.u32 %v1946_v2, %v1774_v4  ;;  %v1947_v9 = vld [vmem:[#allocation5 + $0x38c] sm:$0xf]  ;;  %v1708_v11 = vld [vmem:[#allocation5 + $0x300] sm:$0xf] }
  0x12   :  { %v1781_v8 = vor.u32 %v1955_v6, %v1780_v5  ;;  %v1782_v10 = vld [vmem:[#allocation5 + $0x3c8] sm:$0xf0]  ;;  %v1938_v13 = vld [vmem:[#allocation5 + $0x33c] sm:$0xf0]  ;;  %v1930_v14 = vld [vmem:[#allocation5 + $0x304] sm:$0xf] }
  0x13   :  { %870 = vmatpush.bf16.msra.mxu0 %v1773_v3  ;;  %v1785_v12 = vor.u32 %v1947_v9, %v1782_v10  ;;  %v1710_v15 = vld [vmem:[#allocation5 + $0x340] sm:$0xf0]  ;;  %889 = vmatpush.bf16.msra.mxu1 %v1777_v7  ;;  %v1709_v16 = vor.u32 %v1938_v13, %v1708_v11  ;;  %v1716_v18 = vld [vmem:[#allocation5 + $0x308] sm:$0xf]  ;;  %v1931_v20 = vld [vmem:[#allocation5 + $0x30c] sm:$0xf] }
  0x14   :  { %908 = vmatpush.bf16.msra.mxu2 %v1781_v8  ;;  %v1713_v17 = vor.u32 %v1930_v14, %v1710_v15  ;;  %v1939_v19 = vld [vmem:[#allocation5 + $0x344] sm:$0xf0]  ;;  %v1718_v22 = vld [vmem:[#allocation5 + $0x348] sm:$0xf0]  ;;  %v1644_v23 = vld [vmem:[#allocation5 + $0x280] sm:$0xf] }
  0x15   :  { %927 = vmatpush.bf16.msra.mxu3 %v1785_v12  ;;  %v1717_v21 = vor.u32 %v1939_v19, %v1716_v18  ;;  %v1922_v24 = vld [vmem:[#allocation5 + $0x2bc] sm:$0xf0]  ;;  %v1721_v25 = vor.u32 %v1931_v20, %v1718_v22  ;;  %v1914_v26 = vld [vmem:[#allocation5 + $0x284] sm:$0xf]  ;;  %v1652_v28 = vld [vmem:[#allocation5 + $0x288] sm:$0xf] }
  0x16   :  { %v1646_v27 = vld [vmem:[#allocation5 + $0x2c0] sm:$0xf0]  ;;  %v1645_v29 = vor.u32 %v1922_v24, %v1644_v23  ;;  %v1923_v30 = vld [vmem:[#allocation5 + $0x2c4] sm:$0xf0]  ;;  %v1915_v31 = vld [vmem:[#allocation5 + $0x28c] sm:$0xf] }
  0x17   :  { %871 = vmatpush.bf16.msra.mxu0 %v1709_v16  ;;  %v1654_v32 = vld [vmem:[#allocation5 + $0x2c8] sm:$0xf0]  ;;  %890 = vmatpush.bf16.msra.mxu1 %v1713_v17  ;;  %v1649_v33 = vor.u32 %v1914_v26, %v1646_v27  ;;  %v1653_v34 = vor.u32 %v1923_v30, %v1652_v28  ;;  %v1580_v35 = vld [vmem:[#allocation5 + $0x200] sm:$0xf]  ;;  %v1898_v37 = vld [vmem:[#allocation5 + $0x204] sm:$0xf] }
  0x18   :  { %909 = vmatpush.bf16.msra.mxu2 %v1717_v21  ;;  %v1906_v36 = vld [vmem:[#allocation5 + $0x23c] sm:$0xf0]  ;;  %v1657_v38 = vor.u32 %v1915_v31, %v1654_v32  ;;  %v1582_v39 = vld [vmem:[#allocation5 + $0x240] sm:$0xf0]  ;;  %v1588_v40 = vld [vmem:[#allocation5 + $0x208] sm:$0xf] }
  0x19   :  { %928 = vmatpush.bf16.msra.mxu3 %v1721_v25  ;;  %v1907_v41 = vld [vmem:[#allocation5 + $0x244] sm:$0xf0]  ;;  %v1899_v42 = vld [vmem:[#allocation5 + $0x20c] sm:$0xf]  ;;  %v1581_v44 = vor.u32 %v1906_v36, %v1580_v35  ;;  %v1585_v45 = vor.u32 %v1898_v37, %v1582_v39  ;;  %v1516_v47 = vld [vmem:[#allocation5 + $0x180] sm:$0xf] }
  0x1a   :  { %v1590_v43 = vld [vmem:[#allocation5 + $0x248] sm:$0xf0]  ;;  %v1589_v46 = vor.u32 %v1907_v41, %v1588_v40  ;;  %v1890_v48 = vld [vmem:[#allocation5 + $0x1bc] sm:$0xf0]  ;;  %v1882_v49 = vld [vmem:[#allocation5 + $0x184] sm:$0xf] }
  0x1b   :  { %872 = vmatpush.bf16.msra.mxu0 %v1645_v29  ;;  %891 = vmatpush.bf16.msra.mxu1 %v1649_v33  ;;  %v1593_v50 = vor.u32 %v1899_v42, %v1590_v43  ;;  %v1518_v51 = vld [vmem:[#allocation5 + $0x1c0] sm:$0xf0]  ;;  %v1524_v52 = vld [vmem:[#allocation5 + $0x188] sm:$0xf]  ;;  %v1883_v54 = vld [vmem:[#allocation5 + $0x18c] sm:$0xf]  ;;  %v1517_v56 = vor.u32 %v1890_v48, %v1516_v47 }
  0x1c   :  { %910 = vmatpush.bf16.msra.mxu2 %v1653_v34  ;;  %v1891_v53 = vld [vmem:[#allocation5 + $0x1c4] sm:$0xf0]  ;;  %v1526_v55 = vld [vmem:[#allocation5 + $0x1c8] sm:$0xf0]  ;;  %v1521_v57 = vor.u32 %v1882_v49, %v1518_v51  ;;  %v1452_v59 = vld [vmem:[#allocation5 + $0x100] sm:$0xf] }
  0x1d   :  { %929 = vmatpush.bf16.msra.mxu3 %v1657_v38  ;;  %v1525_v58 = vor.u32 %v1891_v53, %v1524_v52  ;;  %v1874_v60 = vld [vmem:[#allocation5 + $0x13c] sm:$0xf0]  ;;  %v1866_v61 = vld [vmem:[#allocation5 + $0x104] sm:$0xf]  ;;  %v1529_v62 = vor.u32 %v1883_v54, %v1526_v55  ;;  %v1460_v0 = vld [vmem:[#allocation5 + $0x108] sm:$0xf] }
  0x1e   :  { %v1454_v63 = vld [vmem:[#allocation5 + $0x140] sm:$0xf0]  ;;  %v1875_v1 = vld [vmem:[#allocation5 + $0x144] sm:$0xf0]  ;;  %v1867_v2 = vld [vmem:[#allocation5 + $0x10c] sm:$0xf]  ;;  %v1453_v4 = vor.u32 %v1874_v60, %v1452_v59 }
  0x1f   :  { %873 = vmatpush.bf16.msra.mxu0 %v1581_v44  ;;  %892 = vmatpush.bf16.msra.mxu1 %v1585_v45  ;;  %v1462_v3 = vld [vmem:[#allocation5 + $0x148] sm:$0xf0]  ;;  %v1457_v5 = vor.u32 %v1866_v61, %v1454_v63  ;;  %v1461_v6 = vor.u32 %v1875_v1, %v1460_v0  ;;  %v1388_v7 = vld [vmem:[#allocation5 + $0x80] sm:$0xf]  ;;  %v1850_v9 = vld [vmem:[#allocation5 + $0x84] sm:$0xf] }
  0x20   :  { %911 = vmatpush.bf16.msra.mxu2 %v1589_v46  ;;  %v1858_v8 = vld [vmem:[#allocation5 + $0xbc] sm:$0xf0]  ;;  %v1465_v10 = vor.u32 %v1867_v2, %v1462_v3  ;;  %v1390_v11 = vld [vmem:[#allocation5 + $0xc0] sm:$0xf0]  ;;  %v1396_v12 = vld [vmem:[#allocation5 + $0x88] sm:$0xf] }
  0x21   :  { %930 = vmatpush.bf16.msra.mxu3 %v1593_v50  ;;  %v1859_v13 = vld [vmem:[#allocation5 + $0xc4] sm:$0xf0]  ;;  %v1851_v14 = vld [vmem:[#allocation5 + $0x8c] sm:$0xf]  ;;  %v1389_v16 = vor.u32 %v1858_v8, %v1388_v7  ;;  %v1324_v17 = vld [vmem:[#allocation5] sm:$0xf]  ;;  %v1393_v19 = vor.u32 %v1850_v9, %v1390_v11 }
  0x22   :  { %v1398_v15 = vld [vmem:[#allocation5 + $0xc8] sm:$0xf0]  ;;  %v1842_v18 = vld [vmem:[#allocation5 + $0x3c] sm:$0xf0]  ;;  %v1397_v20 = vor.u32 %v1859_v13, %v1396_v12  ;;  %v1834_v21 = vld [vmem:[#allocation5 + $0x4] sm:$0xf] }
  0x23   :  { %874 = vmatpush.bf16.msra.mxu0 %v1517_v56  ;;  %893 = vmatpush.bf16.msra.mxu1 %v1521_v57  ;;  %v1326_v22 = vld [vmem:[#allocation5 + $0x40] sm:$0xf0]  ;;  %v1332_v23 = vld [vmem:[#allocation5 + $0x8] sm:$0xf]  ;;  %v1401_v24 = vor.u32 %v1851_v14, %v1398_v15  ;;  %v1835_v26 = vld [vmem:[#allocation5 + $0xc] sm:$0xf]  ;;  %v1325_v31 = vor.u32 %v1842_v18, %v1324_v17 }
  0x24   :  { %912 = vmatpush.bf16.msra.mxu2 %v1525_v58  ;;  %v1843_v25 = vld [vmem:[#allocation5 + $0x44] sm:$0xf0]  ;;  %v1334_v27 = vld [vmem:[#allocation5 + $0x48] sm:$0xf0]  ;;  %v60_v28 = vld [vmem:[#allocation2] sm:$0xff]  ;;  %v1329_v35 = vor.u32 %v1834_v21, %v1326_v22  ;;  %s2081_s0 = smov [#allocation8]  }
  0x25   :  { %931 = vmatpush.bf16.msra.mxu3 %v1529_v62  ;;  %v1796_v29 = vld [vmem:[#allocation5 + $0x398] sm:$0xf]  ;;  %v61_v32 = vld [vmem:[#allocation2 + $0x8] sm:$0xff]  ;;  %v1949_v33 = vld [vmem:[#allocation5 + $0x39c] sm:$0xf]  ;;  %v1333_v36 = vor.u32 %v1843_v25, %v1332_v23  ;;  %v1337_v37 = vor.u32 %v1835_v26, %v1334_v27  ;;  %s1306_s2 = sshll.u32 %s2081_s0, 4  ;;  %s1307_s2 = int_to_ptr.vmem [resolvable:$true] %s1306_s2 }
  0x26   :  { %v1957_v30 = vld [vmem:[#allocation5 + $0x3d4] sm:$0xf0]  ;;  %v1798_v34 = vld [vmem:[#allocation5 + $0x3d8] sm:$0xf0]  ;;  %v1788_v39 = vld [vmem:[#allocation5 + $0x390] sm:$0xf]  ;;  %v2113_v42 = vpack.c.bf16 %v61_v32, %v60_v28 }
  0x27   :  { %875 = vmatpush.bf16.msra.mxu0 %v1453_v4  ;;  %894 = vmatpush.bf16.msra.mxu1 %v1457_v5  ;;  %v1797_v38 = vor.u32 %v1957_v30, %v1796_v29  ;;  %v1956_v40 = vld [vmem:[#allocation5 + $0x3cc] sm:$0xf0]  ;;  %v1948_v41 = vld [vmem:[#allocation5 + $0x394] sm:$0xf]  ;;  %v1801_v43 = vor.u32 %v1949_v33, %v1798_v34  ;;  %v1732_v45 = vld [vmem:[#allocation5 + $0x318] sm:$0xf] }
  0x28   :  { %913 = vmatpush.bf16.msra.mxu2 %v1461_v6  ;;  %v1790_v44 = vld [vmem:[#allocation5 + $0x3d0] sm:$0xf0]  ;;  %v1941_v46 = vld [vmem:[#allocation5 + $0x354] sm:$0xf0]  ;;  %v1933_v47 = vld [vmem:[#allocation5 + $0x31c] sm:$0xf]  ;;  %v1789_v49 = vor.u32 %v1956_v40, %v1788_v39 }
  0x29   :  { %932 = vmatpush.bf16.msra.mxu3 %v1465_v10  ;;  %v1734_v48 = vld [vmem:[#allocation5 + $0x358] sm:$0xf0]  ;;  %v1793_v50 = vor.u32 %v1948_v41, %v1790_v44  ;;  %v1733_v51 = vor.u32 %v1941_v46, %v1732_v45  ;;  %v1724_v52 = vld [vmem:[#allocation5 + $0x310] sm:$0xf]  ;;  %v1932_v54 = vld [vmem:[#allocation5 + $0x314] sm:$0xf] }
  0x2a   :  { %v1940_v53 = vld [vmem:[#allocation5 + $0x34c] sm:$0xf0]  ;;  %v1737_v55 = vor.u32 %v1933_v47, %v1734_v48  ;;  %v1726_v56 = vld [vmem:[#allocation5 + $0x350] sm:$0xf0]  ;;  %v1668_v57 = vld [vmem:[#allocation5 + $0x298] sm:$0xf] }
  0x2b   :  { %876 = vmatpush.bf16.msra.mxu0 %v1389_v16  ;;  %895 = vmatpush.bf16.msra.mxu1 %v1393_v19  ;;  %v1925_v58 = vld [vmem:[#allocation5 + $0x2d4] sm:$0xf0]  ;;  %v1917_v59 = vld [vmem:[#allocation5 + $0x29c] sm:$0xf]  ;;  %v1725_v61 = vor.u32 %v1940_v53, %v1724_v52  ;;  %v1729_v62 = vor.u32 %v1932_v54, %v1726_v56  ;;  %v1660_v0 = vld [vmem:[#allocation5 + $0x290] sm:$0xf] }
  0x2c   :  { %914 = vmatpush.bf16.msra.mxu2 %v1397_v20  ;;  %v1670_v60 = vld [vmem:[#allocation5 + $0x2d8] sm:$0xf0]  ;;  %v1669_v63 = vor.u32 %v1925_v58, %v1668_v57  ;;  %v1924_v1 = vld [vmem:[#allocation5 + $0x2cc] sm:$0xf0]  ;;  %v1916_v2 = vld [vmem:[#allocation5 + $0x294] sm:$0xf] }
  0x2d   :  { %933 = vmatpush.bf16.msra.mxu3 %v1401_v24  ;;  %v1673_v3 = vor.u32 %v1917_v59, %v1670_v60  ;;  %v1662_v4 = vld [vmem:[#allocation5 + $0x2d0] sm:$0xf0]  ;;  %v1604_v5 = vld [vmem:[#allocation5 + $0x218] sm:$0xf]  ;;  %v1901_v7 = vld [vmem:[#allocation5 + $0x21c] sm:$0xf]  ;;  %v1661_v9 = vor.u32 %v1924_v1, %v1660_v0 }
  0x2e   :  { %v1909_v6 = vld [vmem:[#allocation5 + $0x254] sm:$0xf0]  ;;  %v1606_v8 = vld [vmem:[#allocation5 + $0x258] sm:$0xf0]  ;;  %v1596_v10 = vld [vmem:[#allocation5 + $0x210] sm:$0xf]  ;;  %v1665_v11 = vor.u32 %v1916_v2, %v1662_v4 }
  0x2f   :  { %877 = vmatpush.bf16.msra.mxu0 %v1325_v31  ;;  %896 = vmatpush.bf16.msra.mxu1 %v1329_v35  ;;  %v1605_v12 = vor.u32 %v1909_v6, %v1604_v5  ;;  %v1908_v13 = vld [vmem:[#allocation5 + $0x24c] sm:$0xf0]  ;;  %v1900_v14 = vld [vmem:[#allocation5 + $0x214] sm:$0xf]  ;;  %v1609_v16 = vor.u32 %v1901_v7, %v1606_v8  ;;  %v1540_v18 = vld [vmem:[#allocation5 + $0x198] sm:$0xf] }
  0x30   :  { %915 = vmatpush.bf16.msra.mxu2 %v1333_v36  ;;  %v1598_v15 = vld [vmem:[#allocation5 + $0x250] sm:$0xf0]  ;;  %v1893_v19 = vld [vmem:[#allocation5 + $0x1d4] sm:$0xf0]  ;;  %v1885_v21 = vld [vmem:[#allocation5 + $0x19c] sm:$0xf]  ;;  %v1597_v23 = vor.u32 %v1908_v13, %v1596_v10 }
  0x31   :  { %934 = vmatpush.bf16.msra.mxu3 %v1337_v37  ;;  %v62_v17 = vld [vmem:[#allocation2 + $0x10] sm:$0xff]  ;;  %v63_v20 = vld [vmem:[#allocation2 + $0x18] sm:$0xff]  ;;  %v1601_v24 = vor.u32 %v1900_v14, %v1598_v15  ;;  %v1541_v25 = vor.u32 %v1893_v19, %v1540_v18  ;;  %v1951_v1 = vld [vmem:[#allocation5 + $0x3ac] sm:$0xf]  ;;  %s1308_s5 = sshll.u32 %s2338_s3, 4  ;;  %s2082_s6 = smov 512   ;;  %s1309_s5 = int_to_ptr.hbm [resolvable:$true] %s1308_s5 }
  0x32   :  { %878 = vmatmul.bf16.vlgmr.msra.gmra.mxu0 %v2113_v42  ;;  %897 = vmatmul.bf16.vlgmr.msra.gmra.mxu1 %v2113_v42  ;;  %v1542_v22 = vld [vmem:[#allocation5 + $0x1d8] sm:$0xf0]  ;;  %v1532_v26 = vld [vmem:[#allocation5 + $0x190] sm:$0xf]  ;;  %v1884_v28 = vld [vmem:[#allocation5 + $0x194] sm:$0xf]  ;;  %v2119_v29 = vpack.c.bf16 %v63_v20, %v62_v17 }
  0x33   :  { %916 = vmatmul.bf16.vlgmr.msra.gmra.mxu2 %v2113_v42  ;;  %946 = vmatpush.bf16.msrb.mxu0 %v1789_v49  ;;  %v1892_v27 = vld [vmem:[#allocation5 + $0x1cc] sm:$0xf0]  ;;  %v1545_v30 = vor.u32 %v1885_v21, %v1542_v22  ;;  %v1534_v31 = vld [vmem:[#allocation5 + $0x1d0] sm:$0xf0]  ;;  %v1476_v32 = vld [vmem:[#allocation5 + $0x118] sm:$0xf] }
  0x34   :  { %984 = vmatpush.bf16.msrb.mxu2 %v1797_v38  ;;  %935 = vmatmul.bf16.vlgmr.msra.gmra.mxu3 %v2113_v42  ;;  %v1877_v33 = vld [vmem:[#allocation5 + $0x154] sm:$0xf0]  ;;  %v1869_v34 = vld [vmem:[#allocation5 + $0x11c] sm:$0xf]  ;;  %v1533_v36 = vor.u32 %v1892_v27, %v1532_v26  ;;  %v1537_v37 = vor.u32 %v1884_v28, %v1534_v31  ;;  %v1468_v39 = vld [vmem:[#allocation5 + $0x110] sm:$0xf] }
  0x35   :  { %1003 = vmatpush.bf16.msrb.mxu3 %v1801_v43  ;;  %965 = vmatpush.bf16.msrb.mxu1 %v1793_v50  ;;  %v1478_v35 = vld [vmem:[#allocation5 + $0x158] sm:$0xf0]  ;;  %v1477_v38 = vor.u32 %v1877_v33, %v1476_v32  ;;  %v1876_v40 = vld [vmem:[#allocation5 + $0x14c] sm:$0xf0]  ;;  %v1868_v41 = vld [vmem:[#allocation5 + $0x114] sm:$0xf] }
  0x36   :  { %v1481_v43 = vor.u32 %v1869_v34, %v1478_v35  ;;  %v1470_v44 = vld [vmem:[#allocation5 + $0x150] sm:$0xf0]  ;;  %v1412_v45 = vld [vmem:[#allocation5 + $0x98] sm:$0xf]  ;;  %v1853_v47 = vld [vmem:[#allocation5 + $0x9c] sm:$0xf]  ;;  %v1469_v49 = vor.u32 %v1876_v40, %v1468_v39 }
  0x37   :  { %947 = vmatpush.bf16.msrb.mxu0 %v1725_v61  ;;  %v1861_v46 = vld [vmem:[#allocation5 + $0xd4] sm:$0xf0]  ;;  %v1414_v48 = vld [vmem:[#allocation5 + $0xd8] sm:$0xf0]  ;;  %v1404_v50 = vld [vmem:[#allocation5 + $0x90] sm:$0xf] }
  0x38   :  { %985 = vmatpush.bf16.msrb.mxu2 %v1733_v51  ;;  %v1473_v51 = vor.u32 %v1868_v41, %v1470_v44  ;;  %v1413_v52 = vor.u32 %v1861_v46, %v1412_v45  ;;  %v1860_v53 = vld [vmem:[#allocation5 + $0xcc] sm:$0xf0]  ;;  %v1852_v54 = vld [vmem:[#allocation5 + $0x94] sm:$0xf]  ;;  %v1417_v56 = vor.u32 %v1853_v47, %v1414_v48  ;;  %v1348_v57 = vld [vmem:[#allocation5 + $0x18] sm:$0xf] }
  0x39   :  { %1004 = vmatpush.bf16.msrb.mxu3 %v1737_v55  ;;  %966 = vmatpush.bf16.msrb.mxu1 %v1729_v62  ;;  %v1406_v55 = vld [vmem:[#allocation5 + $0xd0] sm:$0xf0]  ;;  %v1845_v58 = vld [vmem:[#allocation5 + $0x54] sm:$0xf0]  ;;  %v1837_v59 = vld [vmem:[#allocation5 + $0x1c] sm:$0xf] }
  0x3a   :  { %v1350_v60 = vld [vmem:[#allocation5 + $0x58] sm:$0xf0]  ;;  %v1812_v61 = vld [vmem:[#allocation5 + $0x3a8] sm:$0xf]  ;;  %v1340_v0 = vld [vmem:[#allocation5 + $0x10] sm:$0xf]  ;;  %v1349_v4 = vor.u32 %v1845_v58, %v1348_v57 }
  0x3b   :  { %948 = vmatpush.bf16.msrb.mxu0 %v1661_v9  ;;  %v1959_v62 = vld [vmem:[#allocation5 + $0x3e4] sm:$0xf0]  ;;  %v1814_v2 = vld [vmem:[#allocation5 + $0x3e8] sm:$0xf0]  ;;  %v1844_v5 = vld [vmem:[#allocation5 + $0x4c] sm:$0xf0]  ;;  %v1353_v8 = vor.u32 %v1837_v59, %v1350_v60 }
  0x3c   :  { %986 = vmatpush.bf16.msrb.mxu2 %v1669_v63  ;;  %v1405_v63 = vor.u32 %v1860_v53, %v1404_v50  ;;  %v1836_v6 = vld [vmem:[#allocation5 + $0x14] sm:$0xf]  ;;  %v1813_v9 = vor.u32 %v1959_v62, %v1812_v61  ;;  %v1804_v10 = vld [vmem:[#allocation5 + $0x3a0] sm:$0xf]  ;;  %v1817_v13 = vor.u32 %v1951_v1, %v1814_v2  ;;  %v1806_v14 = vld [vmem:[#allocation5 + $0x3e0] sm:$0xf0]  ;;  %v1341_v17 = vor.u32 %v1844_v5, %v1340_v0 }
  0x3d   :  { %1005 = vmatpush.bf16.msrb.mxu3 %v1673_v3  ;;  %967 = vmatpush.bf16.msrb.mxu1 %v1665_v11  ;;  %v1409_v3 = vor.u32 %v1852_v54, %v1406_v55  ;;  %v1342_v7 = vld [vmem:[#allocation5 + $0x50] sm:$0xf0]  ;;  %v1958_v11 = vld [vmem:[#allocation5 + $0x3dc] sm:$0xf0]  ;;  %v1748_v15 = vld [vmem:[#allocation5 + $0x328] sm:$0xf] }
  0x3e   :  { %v1345_v18 = vor.u32 %v1836_v6, %v1342_v7  ;;  %v1805_v19 = vor.u32 %v1958_v11, %v1804_v10  ;;  %v1935_v20 = vld [vmem:[#allocation5 + $0x32c] sm:$0xf]  ;;  %v1934_v26 = vld [vmem:[#allocation5 + $0x324] sm:$0xf]  ;;  %v1684_v28 = vld [vmem:[#allocation5 + $0x2a8] sm:$0xf] }
  0x3f   :  { %949 = vmatpush.bf16.msrb.mxu0 %v1597_v23  ;;  %v1750_v21 = vld [vmem:[#allocation5 + $0x368] sm:$0xf0]  ;;  %v1742_v27 = vld [vmem:[#allocation5 + $0x360] sm:$0xf0]  ;;  %v1620_v41 = vld [vmem:[#allocation5 + $0x228] sm:$0xf] }
  0x40   :  { %987 = vmatpush.bf16.msrb.mxu2 %v1605_v12  ;;  %v1950_v12 = vld [vmem:[#allocation5 + $0x3a4] sm:$0xf]  ;;  %v1753_v31 = vor.u32 %v1935_v20, %v1750_v21  ;;  %v1919_v33 = vld [vmem:[#allocation5 + $0x2ac] sm:$0xf]  ;;  %v1745_v35 = vor.u32 %v1934_v26, %v1742_v27  ;;  %v1612_v50 = vld [vmem:[#allocation5 + $0x220] sm:$0xf] }
  0x41   :  { %1006 = vmatpush.bf16.msrb.mxu3 %v1609_v16  ;;  %968 = vmatpush.bf16.msrb.mxu1 %v1601_v24  ;;  %v1943_v16 = vld [vmem:[#allocation5 + $0x364] sm:$0xf0]  ;;  %v1809_v22 = vor.u32 %v1950_v12, %v1806_v14  ;;  %v1740_v24 = vld [vmem:[#allocation5 + $0x320] sm:$0xf]  ;;  %v1686_v34 = vld [vmem:[#allocation5 + $0x2e8] sm:$0xf0] }
  0x42   :  { %883 = vmatmul.bf16.gmra.mxu0 %v2119_v29  ;;  %902 = vmatmul.bf16.gmra.mxu1 %v2119_v29  ;;  %v1749_v23 = vor.u32 %v1943_v16, %v1748_v15  ;;  %v1918_v39 = vld [vmem:[#allocation5 + $0x2a4] sm:$0xf]  ;;  %v1689_v44 = vor.u32 %v1919_v33, %v1686_v34  ;;  %v1903_v46 = vld [vmem:[#allocation5 + $0x22c] sm:$0xf]  ;;  %v1556_v54 = vld [vmem:[#allocation5 + $0x1a8] sm:$0xf] }
  0x43   :  { %921 = vmatmul.bf16.gmra.mxu2 %v2119_v29  ;;  %950 = vmatpush.bf16.msrb.mxu0 %v1533_v36  ;;  %v1678_v40 = vld [vmem:[#allocation5 + $0x2e0] sm:$0xf0]  ;;  %v1622_v47 = vld [vmem:[#allocation5 + $0x268] sm:$0xf0]  ;;  %v1895_v55 = vld [vmem:[#allocation5 + $0x1e4] sm:$0xf0] }
  0x44   :  { %988 = vmatpush.bf16.msrb.mxu2 %v1541_v25  ;;  %940 = vmatmul.bf16.gmra.mxu3 %v2119_v29  ;;  %v1942_v25 = vld [vmem:[#allocation5 + $0x35c] sm:$0xf0]  ;;  %v1681_v48 = vor.u32 %v1918_v39, %v1678_v40  ;;  %v1614_v53 = vld [vmem:[#allocation5 + $0x260] sm:$0xf0]  ;;  %v1887_v58 = vld [vmem:[#allocation5 + $0x1ac] sm:$0xf]  ;;  %v1557_v61 = vor.u32 %v1895_v55, %v1556_v54 }
  0x45   :  { %1007 = vmatpush.bf16.msrb.mxu3 %v1545_v30  ;;  %969 = vmatpush.bf16.msrb.mxu1 %v1537_v37  ;;  %v1927_v30 = vld [vmem:[#allocation5 + $0x2e4] sm:$0xf0]  ;;  %v1741_v32 = vor.u32 %v1942_v25, %v1740_v24  ;;  %v1676_v37 = vld [vmem:[#allocation5 + $0x2a0] sm:$0xf]  ;;  %v1558_v59 = vld [vmem:[#allocation5 + $0x1e8] sm:$0xf0] }
  0x46   :  { %v1685_v36 = vor.u32 %v1927_v30, %v1684_v28  ;;  %v1548_v62 = vld [vmem:[#allocation5 + $0x1a0] sm:$0xf]  ;;  %v1886_v0 = vld [vmem:[#allocation5 + $0x1a4] sm:$0xf]  ;;  %v1492_v2 = vld [vmem:[#allocation5 + $0x128] sm:$0xf] }
  0x47   :  { %951 = vmatpush.bf16.msrb.mxu0 %v1469_v49  ;;  %v1550_v1 = vld [vmem:[#allocation5 + $0x1e0] sm:$0xf0]  ;;  %v1871_v6 = vld [vmem:[#allocation5 + $0x12c] sm:$0xf]  ;;  %v1484_v10 = vld [vmem:[#allocation5 + $0x120] sm:$0xf] }
  0x48   :  { %989 = vmatpush.bf16.msrb.mxu2 %v1477_v38  ;;  %v1926_v38 = vld [vmem:[#allocation5 + $0x2dc] sm:$0xf0]  ;;  %v1494_v7 = vld [vmem:[#allocation5 + $0x168] sm:$0xf0]  ;;  %v1870_v12 = vld [vmem:[#allocation5 + $0x124] sm:$0xf] }
  0x49   :  { %1008 = vmatpush.bf16.msrb.mxu3 %v1481_v43  ;;  %970 = vmatpush.bf16.msrb.mxu1 %v1473_v51  ;;  %v1911_v43 = vld [vmem:[#allocation5 + $0x264] sm:$0xf0]  ;;  %v1677_v45 = vor.u32 %v1926_v38, %v1676_v37  ;;  %v1910_v51 = vld [vmem:[#allocation5 + $0x25c] sm:$0xf0]  ;;  %v1497_v16 = vor.u32 %v1871_v6, %v1494_v7  ;;  %v1854_v24 = vld [vmem:[#allocation5 + $0xa4] sm:$0xf] }
  0x4a   :  { %v1621_v49 = vor.u32 %v1911_v43, %v1620_v41  ;;  %v1613_v57 = vor.u32 %v1910_v51, %v1612_v50  ;;  %v1878_v11 = vld [vmem:[#allocation5 + $0x15c] sm:$0xf0]  ;;  %v1428_v14 = vld [vmem:[#allocation5 + $0xa8] sm:$0xf]  ;;  %v1422_v25 = vld [vmem:[#allocation5 + $0xe0] sm:$0xf0] }
  0x4b   :  { %952 = vmatpush.bf16.msrb.mxu0 %v1405_v63  ;;  %v1894_v63 = vld [vmem:[#allocation5 + $0x1dc] sm:$0xf0]  ;;  %v1863_v15 = vld [vmem:[#allocation5 + $0xe4] sm:$0xf0]  ;;  %v1828_v28 = vld [vmem:[#allocation5 + $0x3b8] sm:$0xf] }
  0x4c   :  { %990 = vmatpush.bf16.msrb.mxu2 %v1413_v52  ;;  %v1902_v52 = vld [vmem:[#allocation5 + $0x224] sm:$0xf]  ;;  %v1549_v5 = vor.u32 %v1894_v63, %v1548_v62  ;;  %v1429_v21 = vor.u32 %v1863_v15, %v1428_v14  ;;  %v1364_v26 = vld [vmem:[#allocation5 + $0x28] sm:$0xf]  ;;  %v1961_v30 = vld [vmem:[#allocation5 + $0x3f4] sm:$0xf0] }
  0x4d   :  { %1009 = vmatpush.bf16.msrb.mxu3 %v1417_v56  ;;  %971 = vmatpush.bf16.msrb.mxu1 %v1409_v3  ;;  %v1625_v56 = vor.u32 %v1903_v46, %v1622_v47  ;;  %v1617_v60 = vor.u32 %v1902_v52, %v1614_v53  ;;  %v1879_v3 = vld [vmem:[#allocation5 + $0x164] sm:$0xf0]  ;;  %v1839_v33 = vld [vmem:[#allocation5 + $0x2c] sm:$0xf]  ;;  %v1846_v38 = vld [vmem:[#allocation5 + $0x5c] sm:$0xf0]  ;;  %v1829_v41 = vor.u32 %v1961_v30, %v1828_v28 }
  0x4e   :  { %v1847_v27 = vld [vmem:[#allocation5 + $0x64] sm:$0xf0]  ;;  %v1366_v34 = vld [vmem:[#allocation5 + $0x68] sm:$0xf0]  ;;  %v1838_v39 = vld [vmem:[#allocation5 + $0x24] sm:$0xf] }
  0x4f   :  { %953 = vmatpush.bf16.msrb.mxu0 %v1341_v17  ;;  %v1485_v17 = vor.u32 %v1878_v11, %v1484_v10  ;;  %v1365_v37 = vor.u32 %v1847_v27, %v1364_v26  ;;  %v1358_v40 = vld [vmem:[#allocation5 + $0x60] sm:$0xf0]  ;;  %v1953_v43 = vld [vmem:[#allocation5 + $0x3bc] sm:$0xf]  ;;  %v1960_v46 = vld [vmem:[#allocation5 + $0x3ec] sm:$0xf0] }
  0x50   :  { %991 = vmatpush.bf16.msrb.mxu2 %v1349_v4  ;;  %v1561_v4 = vor.u32 %v1887_v58, %v1558_v59  ;;  %v1952_v47 = vld [vmem:[#allocation5 + $0x3b4] sm:$0xf]  ;;  %v1764_v51 = vld [vmem:[#allocation5 + $0x338] sm:$0xf]  ;;  %v1361_v53 = vor.u32 %v1838_v39, %v1358_v40  ;;  %v1766_v58 = vld [vmem:[#allocation5 + $0x378] sm:$0xf0] }
  0x51   :  { %1010 = vmatpush.bf16.msrb.mxu3 %v1353_v8  ;;  %972 = vmatpush.bf16.msrb.mxu1 %v1345_v18  ;;  %v1553_v8 = vor.u32 %v1886_v0, %v1550_v1  ;;  %v1855_v18 = vld [vmem:[#allocation5 + $0xac] sm:$0xf]  ;;  %v1945_v52 = vld [vmem:[#allocation5 + $0x374] sm:$0xf0]  ;;  %v1936_v63 = vld [vmem:[#allocation5 + $0x334] sm:$0xf] }
  0x52   :  { %954 = vmatmul.bf16.vlgmr.msrb.gmra.mxu0 %v2113_v42  ;;  %v1765_v59 = vor.u32 %v1945_v52, %v1764_v51  ;;  %v1758_v0 = vld [vmem:[#allocation5 + $0x370] sm:$0xf0]  ;;  %v1700_v1 = vld [vmem:[#allocation5 + $0x2b8] sm:$0xf]  ;;  %v1692_v7 = vld [vmem:[#allocation5 + $0x2b0] sm:$0xf] }
  0x53   :  { %1022 = vmatpush.bf16.msra.mxu0 %v1805_v19  ;;  %992 = vmatmul.bf16.vlgmr.msrb.gmra.mxu2 %v2113_v42  ;;  %v1430_v19 = vld [vmem:[#allocation5 + $0xe8] sm:$0xf0]  ;;  %v1761_v6 = vor.u32 %v1936_v63, %v1758_v0  ;;  %v1920_v11 = vld [vmem:[#allocation5 + $0x2b4] sm:$0xf]  ;;  %v1913_v14 = vld [vmem:[#allocation5 + $0x274] sm:$0xf0] }
  0x54   :  { %1060 = vmatpush.bf16.msra.mxu2 %v1813_v9  ;;  %973 = vmatmul.bf16.vlgmr.msrb.gmra.mxu1 %v2113_v42  ;;  %v1493_v9 = vor.u32 %v1879_v3, %v1492_v2  ;;  %v1929_v2 = vld [vmem:[#allocation5 + $0x2f4] sm:$0xf0]  ;;  %v1921_v3 = vld [vmem:[#allocation5 + $0x2bc] sm:$0xf]  ;;  %s2083_s7 = smov 32  }
  0x55   :  { %1079 = vmatpush.bf16.msra.mxu3 %v1817_v13  ;;  %1041 = vmatpush.bf16.msra.mxu1 %v1809_v22  ;;  %v1486_v13 = vld [vmem:[#allocation5 + $0x160] sm:$0xf0]  ;;  %v1420_v22 = vld [vmem:[#allocation5 + $0xa0] sm:$0xf]  ;;  %v1905_v15 = vld [vmem:[#allocation5 + $0x23c] sm:$0xf] }
  0x56   :  { %1011 = vmatmul.bf16.vlgmr.msrb.gmra.mxu3 %v2113_v42  ;;  %v1489_v20 = vor.u32 %v1870_v12, %v1486_v13  ;;  %v1694_v12 = vld [vmem:[#allocation5 + $0x2f0] sm:$0xf0]  ;;  %v1636_v13 = vld [vmem:[#allocation5 + $0x238] sm:$0xf]  ;;  %v1889_v27 = vld [vmem:[#allocation5 + $0x1bc] sm:$0xf] }
  0x57   :  { %1023 = vmatpush.bf16.msra.mxu0 %v1741_v32  ;;  %v1897_v26 = vld [vmem:[#allocation5 + $0x1f4] sm:$0xf0]  ;;  %v1574_v28 = vld [vmem:[#allocation5 + $0x1f8] sm:$0xf0] }
  0x58   :  { %1061 = vmatpush.bf16.msra.mxu2 %v1749_v23  ;;  %v1862_v23 = vld [vmem:[#allocation5 + $0xdc] sm:$0xf0]  ;;  %v1881_v39 = vld [vmem:[#allocation5 + $0x174] sm:$0xf0]  ;;  %v1873_v40 = vld [vmem:[#allocation5 + $0x13c] sm:$0xf] }
  0x59   :  { %1080 = vmatpush.bf16.msra.mxu3 %v1753_v31  ;;  %1042 = vmatpush.bf16.msra.mxu1 %v1745_v35  ;;  %v1433_v31 = vor.u32 %v1855_v18, %v1430_v19  ;;  %v1421_v32 = vor.u32 %v1862_v23, %v1420_v22  ;;  %v1356_v35 = vld [vmem:[#allocation5 + $0x20] sm:$0xf]  ;;  %v1697_v18 = vor.u32 %v1920_v11, %v1694_v12  ;;  %v1628_v19 = vld [vmem:[#allocation5 + $0x230] sm:$0xf]  ;;  %v1904_v23 = vld [vmem:[#allocation5 + $0x234] sm:$0xf] }
  0x5a   :  { %v1357_v50 = vor.u32 %v1846_v38, %v1356_v35  ;;  %v1577_v35 = vor.u32 %v1889_v27, %v1574_v28  ;;  %v1508_v38 = vld [vmem:[#allocation5 + $0x138] sm:$0xf] }
  0x5b   :  { %1024 = vmatpush.bf16.msra.mxu0 %v1677_v45  ;;  %v1820_v45 = vld [vmem:[#allocation5 + $0x3b0] sm:$0xf]  ;;  %v1444_v51 = vld [vmem:[#allocation5 + $0xb8] sm:$0xf] }
  0x5c   :  { %1062 = vmatpush.bf16.msra.mxu2 %v1685_v36  ;;  %v1425_v36 = vor.u32 %v1854_v24, %v1422_v25  ;;  %v1821_v55 = vor.u32 %v1960_v46, %v1820_v45  ;;  %v1630_v24 = vld [vmem:[#allocation5 + $0x270] sm:$0xf0]  ;;  %v1572_v25 = vld [vmem:[#allocation5 + $0x1b8] sm:$0xf]  ;;  %v1500_v45 = vld [vmem:[#allocation5 + $0x130] sm:$0xf] }
  0x5d   :  { %1081 = vmatpush.bf16.msra.mxu3 %v1689_v44  ;;  %1043 = vmatpush.bf16.msra.mxu1 %v1681_v48  ;;  %v1830_v44 = vld [vmem:[#allocation5 + $0x3f8] sm:$0xf0]  ;;  %v1822_v48 = vld [vmem:[#allocation5 + $0x3f0] sm:$0xf0]  ;;  %v1880_v46 = vld [vmem:[#allocation5 + $0x16c] sm:$0xf0] }
  0x5e   :  { %v1833_v54 = vor.u32 %v1953_v43, %v1830_v44  ;;  %v1865_v52 = vld [vmem:[#allocation5 + $0xf4] sm:$0xf0] }
  0x5f   :  { %1025 = vmatpush.bf16.msra.mxu0 %v1613_v57  ;;  %v1937_v57 = vld [vmem:[#allocation5 + $0x33c] sm:$0xf]  ;;  %v1380_v63 = vld [vmem:[#allocation5 + $0x38] sm:$0xf] }
  0x60   :  { %1063 = vmatpush.bf16.msra.mxu2 %v1621_v49  ;;  %v1369_v49 = vor.u32 %v1839_v33, %v1366_v34  ;;  %v1769_v62 = vor.u32 %v1937_v57, %v1766_v58  ;;  %v1896_v33 = vld [vmem:[#allocation5 + $0x1ec] sm:$0xf0]  ;;  %v1573_v34 = vor.u32 %v1897_v26, %v1572_v25  ;;  %v1849_v0 = vld [vmem:[#allocation5 + $0x74] sm:$0xf0]  ;;  %v194_v25 = vld [vmem:[#allocation7] sm:$0xff] }
  0x61   :  { %1082 = vmatpush.bf16.msra.mxu3 %v1625_v56  ;;  %1044 = vmatpush.bf16.msra.mxu1 %v1617_v60  ;;  %v1825_v56 = vor.u32 %v1952_v47, %v1822_v48  ;;  %v1756_v60 = vld [vmem:[#allocation5 + $0x330] sm:$0xf]  ;;  %v1509_v47 = vor.u32 %v1881_v39, %v1508_v38  ;;  %v2159_v27 = vperm.slane %v194_v25, 1  ;;  %v2161_v28 = vperm.slane %v194_v25, 4 }
  0x62   :  { %959 = vmatmul.bf16.gmra.mxu0 %v2119_v29  ;;  %v1436_v57 = vld [vmem:[#allocation5 + $0xb0] sm:$0xf]  ;;  %v2174_v39 = vperm.slane %v194_v25, 3 }
  0x63   :  { %1026 = vmatpush.bf16.msra.mxu0 %v1549_v5  ;;  %997 = vmatmul.bf16.gmra.mxu2 %v2119_v29  ;;  %v1864_v58 = vld [vmem:[#allocation5 + $0xec] sm:$0xf0] }
  0x64   :  { %1064 = vmatpush.bf16.msra.mxu2 %v1557_v61  ;;  %978 = vmatmul.bf16.gmra.mxu1 %v2119_v29  ;;  %v1944_v61 = vld [vmem:[#allocation5 + $0x36c] sm:$0xf0] }
  0x65   :  { %1083 = vmatpush.bf16.msra.mxu3 %v1561_v4  ;;  %1045 = vmatpush.bf16.msra.mxu1 %v1553_v8  ;;  %v1702_v4 = vld [vmem:[#allocation5 + $0x2f8] sm:$0xf0]  ;;  %v1757_v5 = vor.u32 %v1944_v61, %v1756_v60  ;;  %v1928_v8 = vld [vmem:[#allocation5 + $0x2ec] sm:$0xf0]  ;;  %v1856_v61 = vld [vmem:[#allocation5 + $0xb4] sm:$0xf] }
  0x66   :  { %1016 = vmatmul.bf16.gmra.mxu3 %v2119_v29  ;;  %v1705_v10 = vor.u32 %v1921_v3, %v1702_v4  ;;  %v1437_v3 = vor.u32 %v1864_v58, %v1436_v57 }
  0x67   :  { %1027 = vmatpush.bf16.msra.mxu0 %v1485_v17  ;;  %v1693_v17 = vor.u32 %v1928_v8, %v1692_v7  ;;  %v1848_v8 = vld [vmem:[#allocation5 + $0x6c] sm:$0xf0] }
  0x68   :  { %1065 = vmatpush.bf16.msra.mxu2 %v1493_v9  ;;  %v1701_v9 = vor.u32 %v1929_v2, %v1700_v1  ;;  %v1841_v1 = vld [vmem:[#allocation5 + $0x3c] sm:$0xf] }
  0x69   :  { %1084 = vmatpush.bf16.msra.mxu3 %v1497_v16  ;;  %1046 = vmatpush.bf16.msra.mxu1 %v1489_v20  ;;  %v1638_v16 = vld [vmem:[#allocation5 + $0x278] sm:$0xf0]  ;;  %v1912_v20 = vld [vmem:[#allocation5 + $0x26c] sm:$0xf0] }
  0x6a   :  { %v1641_v22 = vor.u32 %v1905_v15, %v1638_v16  ;;  %v1629_v30 = vor.u32 %v1912_v20, %v1628_v19  ;;  %v1382_v2 = vld [vmem:[#allocation5 + $0x78] sm:$0xf0] }
  0x6b   :  { %1028 = vmatpush.bf16.msra.mxu0 %v1421_v32  ;;  %v1564_v32 = vld [vmem:[#allocation5 + $0x1b0] sm:$0xf]  ;;  %v1385_v7 = vor.u32 %v1841_v1, %v1382_v2 }
  0x6c   :  { %1066 = vmatpush.bf16.msra.mxu2 %v1429_v21  ;;  %v1637_v21 = vor.u32 %v1913_v14, %v1636_v13  ;;  %v1565_v43 = vor.u32 %v1896_v33, %v1564_v32 }
  0x6d   :  { %1085 = vmatpush.bf16.msra.mxu3 %v1433_v31  ;;  %1047 = vmatpush.bf16.msra.mxu1 %v1425_v36  ;;  %v1633_v31 = vor.u32 %v1904_v23, %v1630_v24  ;;  %v1888_v36 = vld [vmem:[#allocation5 + $0x1b4] sm:$0xf] }
  0x6f   :  { %1029 = vmatpush.bf16.msra.mxu0 %v1357_v50  ;;  %v1502_v50 = vld [vmem:[#allocation5 + $0x170] sm:$0xf0] }
  0x70   :  { %1067 = vmatpush.bf16.msra.mxu2 %v1365_v37  ;;  %v1566_v37 = vld [vmem:[#allocation5 + $0x1f0] sm:$0xf0] }
  0x71   :  { %1086 = vmatpush.bf16.msra.mxu3 %v1369_v49  ;;  %1048 = vmatpush.bf16.msra.mxu1 %v1361_v53  ;;  %v1569_v44 = vor.u32 %v1888_v36, %v1566_v37  ;;  %v1872_v49 = vld [vmem:[#allocation5 + $0x134] sm:$0xf]  ;;  %v1857_v53 = vld [vmem:[#allocation5 + $0xbc] sm:$0xf]  ;;  %v2171_v36 = vperm.slane %v194_v25, 2 }
  0x72   :  { %1030 = vmatmul.bf16.vlgmr.msra.gmra.mxu0 %v2113_v42 }
  0x73   :  { %1098 = vmatpush.bf16.msrb.mxu0 %v1821_v55  ;;  %1068 = vmatmul.bf16.vlgmr.msra.gmra.mxu2 %v2113_v42  ;;  %v1501_v55 = vor.u32 %v1880_v46, %v1500_v45 }
  0x74   :  { %1136 = vmatpush.bf16.msrb.mxu2 %v1829_v41  ;;  %1049 = vmatmul.bf16.vlgmr.msra.gmra.mxu1 %v2113_v42  ;;  %v1510_v41 = vld [vmem:[#allocation5 + $0x178] sm:$0xf0] }
  0x75   :  { %1155 = vmatpush.bf16.msrb.mxu3 %v1833_v54  ;;  %1117 = vmatpush.bf16.msrb.mxu1 %v1825_v56  ;;  %v1513_v48 = vor.u32 %v1873_v40, %v1510_v41  ;;  %v1446_v54 = vld [vmem:[#allocation5 + $0xf8] sm:$0xf0]  ;;  %v1505_v56 = vor.u32 %v1872_v49, %v1502_v50 }
  0x76   :  { %1087 = vmatmul.bf16.vlgmr.msra.gmra.mxu3 %v2113_v42  ;;  %v1449_v60 = vor.u32 %v1857_v53, %v1446_v54 }
  0x77   :  { %1099 = vmatpush.bf16.msrb.mxu0 %v1757_v5  ;;  %v1372_v5 = vld [vmem:[#allocation5 + $0x30] sm:$0xf] }
  0x78   :  { %1137 = vmatpush.bf16.msrb.mxu2 %v1765_v59  ;;  %v1445_v59 = vor.u32 %v1865_v52, %v1444_v51  ;;  %v1373_v11 = vor.u32 %v1848_v8, %v1372_v5 }
  0x79   :  { %1156 = vmatpush.bf16.msrb.mxu3 %v1769_v62  ;;  %1118 = vmatpush.bf16.msrb.mxu1 %v1761_v6  ;;  %v1438_v62 = vld [vmem:[#allocation5 + $0xf0] sm:$0xf0]  ;;  %v1381_v6 = vor.u32 %v1849_v0, %v1380_v63 }
  0x7a   :  { %v1441_v4 = vor.u32 %v1856_v61, %v1438_v62 }
  0x7b   :  { %1100 = vmatpush.bf16.msrb.mxu0 %v1693_v17 }
  0x7c   :  { %1138 = vmatpush.bf16.msrb.mxu2 %v1701_v9  ;;  %v1840_v9 = vld [vmem:[#allocation5 + $0x34] sm:$0xf] }
  0x7d   :  { %1157 = vmatpush.bf16.msrb.mxu3 %v1705_v10  ;;  %1119 = vmatpush.bf16.msrb.mxu1 %v1697_v18  ;;  %v1374_v10 = vld [vmem:[#allocation5 + $0x70] sm:$0xf0] }
  0x7e   :  { %v1377_v12 = vor.u32 %v1840_v9, %v1374_v10 }
  0x7f   :  { %1101 = vmatpush.bf16.msrb.mxu0 %v1629_v30 }
  0x80   :  { %1139 = vmatpush.bf16.msrb.mxu2 %v1637_v21 }
  0x81   :  { %1158 = vmatpush.bf16.msrb.mxu3 %v1641_v22  ;;  %1120 = vmatpush.bf16.msrb.mxu1 %v1633_v31  ;;  %v2165_v31 = vperm.slane %v194_v25, 5 }
  0x82   :  { %1035 = vmatmul.bf16.gmra.mxu0 %v2119_v29 }
  0x83   :  { %1102 = vmatpush.bf16.msrb.mxu0 %v1565_v43  ;;  %1073 = vmatmul.bf16.gmra.mxu2 %v2119_v29 }
  0x84   :  { %1140 = vmatpush.bf16.msrb.mxu2 %v1573_v34  ;;  %1054 = vmatmul.bf16.gmra.mxu1 %v2119_v29 }
  0x85   :  { %1159 = vmatpush.bf16.msrb.mxu3 %v1577_v35  ;;  %1121 = vmatpush.bf16.msrb.mxu1 %v1569_v44  ;;  %v2177_v44 = vperm.slane %v194_v25, 6 }
  0x86   :  { %1092 = vmatmul.bf16.gmra.mxu3 %v2119_v29 }
  0x87   :  { %1103 = vmatpush.bf16.msrb.mxu0 %v1501_v55 }
  0x88   :  { %1141 = vmatpush.bf16.msrb.mxu2 %v1509_v47  ;;  %v2179_v47 = vperm.slane %v194_v25, 7 }
  0x89   :  { %1160 = vmatpush.bf16.msrb.mxu3 %v1513_v48  ;;  %1122 = vmatpush.bf16.msrb.mxu1 %v1505_v56 }
  0x8b   :  { %1104 = vmatpush.bf16.msrb.mxu0 %v1437_v3 }
  0x8c   :  { %1142 = vmatpush.bf16.msrb.mxu2 %v1445_v59 }
  0x8d   :  { %1161 = vmatpush.bf16.msrb.mxu3 %v1449_v60  ;;  %1123 = vmatpush.bf16.msrb.mxu1 %v1441_v4 }
  0x8f   :  { %1105 = vmatpush.bf16.msrb.mxu0 %v1373_v11 }
  0x90   :  { %1143 = vmatpush.bf16.msrb.mxu2 %v1381_v6 }
  0x91   :  { %1162 = vmatpush.bf16.msrb.mxu3 %v1385_v7  ;;  %1124 = vmatpush.bf16.msrb.mxu1 %v1377_v12 }
  0x92   :  { %1106 = vmatmul.bf16.vlgmr.msrb.gmra.mxu0 %v2113_v42 }
  0x93   :  { %1144 = vmatmul.bf16.vlgmr.msrb.gmra.mxu2 %v2113_v42 }
  0x94   :  { %1125 = vmatmul.bf16.vlgmr.msrb.gmra.mxu1 %v2113_v42 }
  0x96   :  { %1163 = vmatmul.bf16.vlgmr.msrb.gmra.mxu3 %v2113_v42 }
  0xa2   :  { %1111 = vmatmul.bf16.gmra.mxu0 %v2119_v29 }
  0xa3   :  { %1149 = vmatmul.bf16.gmra.mxu2 %v2119_v29 }
  0xa4   :  { %1130 = vmatmul.bf16.gmra.mxu1 %v2119_v29 }
  0xa6   :  { %1168 = vmatmul.bf16.gmra.mxu3 %v2119_v29  ;;  %v2157_v29 = vperm.slane %v194_v25, 0 }
  0xaf   :  { %v879_v13 = vpop.f32.mrf.mxu0  ;;  %v898_v14 = vpop.f32.mrf.mxu1 }
  0xb0   :  { %v880_v32 = vadd.f32 %v879_v13, %v2157_v29  ;;  %v899_v34 = vadd.f32 %v898_v14, %v2159_v27 }
  0xb2   :  { %v1174_v41 = vmax.f32 %v880_v32, 0.0  ;;  %v1175_v45 = vmax.f32 %v899_v34, 0.0 }
  0xb6   :  { %v917_v15 = vpop.f32.mrf.mxu2 }
  0xb7   :  { %v936_v16 = vpop.f32.mrf.mxu3  ;;  %v881_v17 = vpop.f32.mrf.mxu0  ;;  %v918_v48 = vadd.f32 %v917_v15, %v2171_v36 }
  0xb8   :  { %v900_v18 = vpop.f32.mrf.mxu1  ;;  %v937_v50 = vadd.f32 %v936_v16, %v2174_v39  ;;  %v882_v53 = vadd.f32 %v881_v17, %v2157_v29 }
  0xb9   :  { %v901_v56 = vadd.f32 %v900_v18, %v2159_v27  ;;  %v1176_v59 = vmax.f32 %v918_v48, 0.0 }
  0xba   :  { %v1177_v63 = vmax.f32 %v937_v50, 0.0  ;;  %v1190_v2 = vmax.f32 %v882_v53, 0.0 }
  0xbb   :  { %v1191_v5 = vmax.f32 %v901_v56, 0.0 }
  0xbe   :  { %v919_v19 = vpop.f32.mrf.mxu2 }
  0xbf   :  { %v938_v20 = vpop.f32.mrf.mxu3  ;;  %v884_v21 = vpop.f32.mrf.mxu0  ;;  %v920_v8 = vadd.f32 %v919_v19, %v2171_v36 }
  0xc0   :  { %v903_v22 = vpop.f32.mrf.mxu1  ;;  %v939_v10 = vadd.f32 %v938_v20, %v2174_v39  ;;  %v885_v13 = vadd.f32 %v884_v21, %v2157_v29 }
  0xc1   :  { %v904_v16 = vadd.f32 %v903_v22, %v2159_v27  ;;  %v1192_v25 = vmax.f32 %v920_v8, 0.0 }
  0xc6   :  { %v2149_v23 = vpop.f32.mrf.mxu2 }
  0xc7   :  { %v2151_v42 = vpop.f32.mrf.mxu3  ;;  %v2153_v24 = vpop.f32.mrf.mxu0 }
  0xc8   :  { %v2155_v26 = vpop.f32.mrf.mxu1  ;;  %v942_v48 = vadd.f32 %v2151_v42, %v2174_v39  ;;  %v887_v53 = vadd.f32 %v2153_v24, %v2157_v29 }
  0xc9   :  { %v906_v56 = vadd.f32 %v2155_v26, %v2159_v27 }
  0xce   :  { %v2163_v30 = vpop.f32.mrf.mxu2 }
  0xcf   :  { %v2168_v33 = vpop.f32.mrf.mxu3  ;;  %v955_v35 = vpop.f32.mrf.mxu0  ;;  %v925_v27 = vadd.f32 %v2163_v30, %v2171_v36 }
  0xd0   :  { %v956_v37 = vadd.f32 %v955_v35, %v2161_v28  ;;  %v1193_v35 = vmax.f32 %v939_v10, 0.0 }
  0xd1   :  { %v974_v38 = vpop.f32.mrf.mxu1 }
  0xd2   :  { %v975_v40 = vadd.f32 %v974_v38, %v2165_v31  ;;  %v1178_v43 = vmax.f32 %v956_v37, 0.0  ;;  %v1206_v38 = vmax.f32 %v885_v13, 0.0  ;;  %v1224_v13 = vmax.f32 %v925_v27, 0.0 }
  0xd4   :  { %v1179_v46 = vmax.f32 %v975_v40, 0.0  ;;  %v2182_v49 = vmax.f32 %v1174_v41, %v1178_v43  ;;  %v1207_v41 = vmax.f32 %v904_v16, 0.0 }
  0xd6   :  { %v2185_v51 = vmax.f32 %v1175_v45, %v1179_v46  ;;  %v993_v52 = vpop.f32.mrf.mxu2  ;;  %v923_v45 = vadd.f32 %v2149_v23, %v2171_v36 }
  0xd7   :  { %v994_v54 = vadd.f32 %v993_v52, %v2177_v44  ;;  %v957_v58 = vpop.f32.mrf.mxu0 }
  0xd8   :  { %v958_v61 = vadd.f32 %v957_v58, %v2161_v28  ;;  %v1208_v58 = vmax.f32 %v923_v45, 0.0 }
  0xd9   :  { %v1012_v55 = vpop.f32.mrf.mxu3  ;;  %v1180_v60 = vmax.f32 %v994_v54, 0.0  ;;  %v976_v62 = vpop.f32.mrf.mxu1 }
  0xda   :  { %v1013_v57 = vadd.f32 %v1012_v55, %v2179_v47  ;;  %v977_v1 = vadd.f32 %v976_v62, %v2165_v31  ;;  %v1194_v4 = vmax.f32 %v958_v61, 0.0  ;;  %v1209_v61 = vmax.f32 %v942_v48, 0.0 }
  0xdb   :  { %v2193_v3 = vmax.f32 %v1176_v59, %v1180_v60 }
  0xdc   :  { %v1181_v0 = vmax.f32 %v1013_v57, 0.0  ;;  %v1195_v7 = vmax.f32 %v977_v1, 0.0  ;;  %v2198_v9 = vmax.f32 %v1190_v2, %v1194_v4  ;;  %v1223_v1 = vmax.f32 %v906_v56, 0.0 }
  0xde   :  { %v2195_v6 = vmax.f32 %v1177_v63, %v1181_v0  ;;  %v2201_v11 = vmax.f32 %v1191_v5, %v1195_v7  ;;  %v995_v12 = vpop.f32.mrf.mxu2  ;;  %v1222_v0 = vmax.f32 %v887_v53, 0.0 }
  0xdf   :  { %v996_v14 = vadd.f32 %v995_v12, %v2177_v44  ;;  %v960_v18 = vpop.f32.mrf.mxu0 }
  0xe0   :  { %v961_v19 = vadd.f32 %v960_v18, %v2161_v28 }
  0xe1   :  { %v1014_v15 = vpop.f32.mrf.mxu3  ;;  %v1196_v32 = vmax.f32 %v996_v14, 0.0  ;;  %v979_v34 = vpop.f32.mrf.mxu1 }
  0xe2   :  { %v1015_v17 = vadd.f32 %v1014_v15, %v2179_v47  ;;  %v980_v37 = vadd.f32 %v979_v34, %v2165_v31  ;;  %v1210_v21 = vmax.f32 %v961_v19, 0.0 }
  0xe3   :  { %v2209_v40 = vmax.f32 %v1192_v25, %v1196_v32 }
  0xe4   :  { %v1197_v20 = vmax.f32 %v1015_v17, 0.0  ;;  %v1211_v22 = vmax.f32 %v980_v37, 0.0  ;;  %v2215_v46 = vmax.f32 %v1206_v38, %v1210_v21 }
  0xe6   :  { %v2211_v43 = vmax.f32 %v1193_v35, %v1197_v20  ;;  %v2219_v50 = vmax.f32 %v1207_v41, %v1211_v22  ;;  %v998_v52 = vpop.f32.mrf.mxu2  ;;  %v195_v20 = vld [vmem:[#allocation7 + $0x8] sm:$0xff] }
  0xe7   :  { %v999_v54 = vadd.f32 %v998_v52, %v2177_v44  ;;  %v962_v23 = vpop.f32.mrf.mxu0  ;;  %v2257_v21 = vperm.slane %v195_v20, 0  ;;  %v2259_v41 = vperm.slane %v195_v20, 1  ;;  %v2261_v22 = vperm.slane %v195_v20, 4 }
  0xe8   :  { %v963_v60 = vadd.f32 %v962_v23, %v2161_v28  ;;  %v944_v28 = vadd.f32 %v2168_v33, %v2174_v39  ;;  %v2265_v48 = vperm.slane %v195_v20, 5  ;;  %v2271_v56 = vperm.slane %v195_v20, 2 }
  0xe9   :  { %v1017_v55 = vpop.f32.mrf.mxu3  ;;  %v1212_v59 = vmax.f32 %v999_v54, 0.0  ;;  %v981_v42 = vpop.f32.mrf.mxu1 }
  0xea   :  { %v1018_v57 = vadd.f32 %v1017_v55, %v2179_v47  ;;  %v982_v63 = vadd.f32 %v981_v42, %v2165_v31  ;;  %v1226_v29 = vmax.f32 %v963_v60, 0.0  ;;  %v1225_v16 = vmax.f32 %v944_v28, 0.0 }
  0xeb   :  { %v2229_v24 = vmax.f32 %v1208_v58, %v1212_v59  ;;  %v2274_v58 = vperm.slane %v195_v20, 3 }
  0xec   :  { %v1213_v62 = vmax.f32 %v1018_v57, 0.0  ;;  %v1227_v26 = vmax.f32 %v982_v63, 0.0  ;;  %v2235_v4 = vmax.f32 %v1222_v0, %v1226_v29  ;;  %v2279_v0 = vperm.slane %v195_v20, 7 }
  0xee   :  { %v2231_v2 = vmax.f32 %v1209_v61, %v1213_v62  ;;  %v2239_v5 = vmax.f32 %v1223_v1, %v1227_v26  ;;  %v1000_v7 = vpop.f32.mrf.mxu2  ;;  %v2277_v61 = vperm.slane %v195_v20, 6 }
  0xef   :  { %v1001_v31 = vadd.f32 %v1000_v7, %v2177_v44  ;;  %v1031_v12 = vpop.f32.mrf.mxu0 }
  0xf0   :  { %v1032_v52 = vadd.f32 %v1031_v12, %v2257_v21 }
  0xf1   :  { %v1019_v8 = vpop.f32.mrf.mxu3  ;;  %v1228_v14 = vmax.f32 %v1001_v31, 0.0  ;;  %v1050_v15 = vpop.f32.mrf.mxu1 }
  0xf2   :  { %v1020_v10 = vadd.f32 %v1019_v8, %v2179_v47  ;;  %v1051_v54 = vadd.f32 %v1050_v15, %v2259_v41  ;;  %v1182_v60 = vmax.f32 %v1032_v52, 0.0 }
  0xf3   :  { %v2243_v30 = vmax.f32 %v1224_v13, %v1228_v14 }
  0xf4   :  { %v1229_v17 = vmax.f32 %v1020_v10, 0.0  ;;  %v1183_v62 = vmax.f32 %v1051_v54, 0.0 }
  0xf6   :  { %v2245_v36 = vmax.f32 %v1225_v16, %v1229_v17  ;;  %v1069_v18 = vpop.f32.mrf.mxu2 }
  0xf7   :  { %v1033_v39 = vpop.f32.mrf.mxu0  ;;  %v1070_v29 = vadd.f32 %v1069_v18, %v2271_v56 }
  0xf8   :  { %v1034_v7 = vadd.f32 %v1033_v39, %v2257_v21 }
  0xf9   :  { %v1088_v33 = vpop.f32.mrf.mxu3  ;;  %v1052_v25 = vpop.f32.mrf.mxu1  ;;  %v1184_v16 = vmax.f32 %v1070_v29, 0.0 }
  0xfa   :  { %v1089_v26 = vadd.f32 %v1088_v33, %v2274_v58  ;;  %v1053_v12 = vadd.f32 %v1052_v25, %v2259_v41  ;;  %v1198_v52 = vmax.f32 %v1034_v7, 0.0 }
  0xfc   :  { %v1185_v20 = vmax.f32 %v1089_v26, 0.0  ;;  %v1199_v25 = vmax.f32 %v1053_v12, 0.0 }
  0xfe   :  { %v1071_v32 = vpop.f32.mrf.mxu2 }
  0xff   :  { %v1036_v44 = vpop.f32.mrf.mxu0 }
 0x101   :  { %v1090_v19 = vpop.f32.mrf.mxu3  ;;  %v2247_v34 = vpop.f32.mrf.mxu1 }
 0x106   :  { %v2249_v47 = vpop.f32.mrf.mxu2 }
 0x107   :  { %v2253_v37 = vpop.f32.mrf.mxu0 }
 0x109   :  { %v2251_v35 = vpop.f32.mrf.mxu3  ;;  %v2255_v38 = vpop.f32.mrf.mxu1 }
 0x10e   :  { %v2263_v45 = vpop.f32.mrf.mxu2 }
 0x10f   :  { %v1107_v55 = vpop.f32.mrf.mxu0 }
 0x110   :  { %v1108_v57 = vadd.f32 %v1107_v55, %v2261_v22 }
 0x111   :  { %v2268_v53 = vpop.f32.mrf.mxu3  ;;  %v1126_v23 = vpop.f32.mrf.mxu1 }
 0x112   :  { %v1127_v59 = vadd.f32 %v1126_v23, %v2265_v48  ;;  %v1186_v42 = vmax.f32 %v1108_v57, 0.0  ;;  %v1072_v23 = vadd.f32 %v1071_v32, %v2271_v56  ;;  %v1056_v32 = vadd.f32 %v2247_v34, %v2259_v41 }
 0x114   :  { %v1187_v63 = vmax.f32 %v1127_v59, 0.0  ;;  %v1254_v1 = vmax.f32 %v1182_v60, %v1186_v42  ;;  %v1091_v42 = vadd.f32 %v1090_v19, %v2274_v58 }
 0x116   :  { %v1255_v27 = vmax.f32 %v1183_v62, %v1187_v63  ;;  %v1145_v28 = vpop.f32.mrf.mxu2  ;;  %v1270_v31 = vmax.f32 %v2182_v49, %v1254_v1  ;;  %v1037_v1 = vadd.f32 %v1036_v44, %v2257_v21 }
 0x117   :  { %v1146_v8 = vadd.f32 %v1145_v28, %v2277_v61  ;;  %v1109_v15 = vpop.f32.mrf.mxu0 }
 0x118   :  { %v1271_v13 = vmax.f32 %v2185_v51, %v1255_v27  ;;  %1286 = vst [vmem:[#allocation8] sm:$0xff] %v1270_v31  ;;  %v1110_v18 = vadd.f32 %v1109_v15, %v2261_v22  ;;  %v1215_v15 = vmax.f32 %v1056_v32, 0.0 }
 0x119   :  { %v1164_v10 = vpop.f32.mrf.mxu3  ;;  %v1188_v17 = vmax.f32 %v1146_v8, 0.0  ;;  %v1128_v33 = vpop.f32.mrf.mxu1 }
 0x11a   :  { %v1165_v14 = vadd.f32 %v1164_v10, %v2279_v0  ;;  %1287 = vst [vmem:[#allocation8 + $0x8] sm:$0xff] %v1271_v13  ;;  %v1129_v49 = vadd.f32 %v1128_v33, %v2265_v48  ;;  %v1202_v55 = vmax.f32 %v1110_v18, 0.0  ;;  %v1201_v10 = vmax.f32 %v1091_v42, 0.0 }
 0x11b   :  { %v1256_v54 = vmax.f32 %v1184_v16, %v1188_v17  ;;  %v1214_v13 = vmax.f32 %v1037_v1, 0.0  ;;  %v1075_v17 = vadd.f32 %v2249_v47, %v2271_v56 }
 0x11c   :  { %v1189_v39 = vmax.f32 %v1165_v14, 0.0  ;;  %v1203_v51 = vmax.f32 %v1129_v49, 0.0  ;;  %v1258_v60 = vmax.f32 %v1198_v52, %v1202_v55 }
 0x11d   :  { %v1272_v59 = vmax.f32 %v2193_v3, %v1256_v54  ;;  %v1039_v54 = vadd.f32 %v2253_v37, %v2257_v21 }
 0x11e   :  { %v1257_v57 = vmax.f32 %v1185_v20, %v1189_v39  ;;  %v1259_v63 = vmax.f32 %v1199_v25, %v1203_v51  ;;  %v1147_v29 = vpop.f32.mrf.mxu2  ;;  %v1274_v26 = vmax.f32 %v2198_v9, %v1258_v60  ;;  %v1094_v20 = vadd.f32 %v2251_v35, %v2274_v58 }
 0x11f   :  { %1288 = vst [vmem:[#allocation8 + $0x10] sm:$0xff] %v1272_v59  ;;  %v1148_v27 = vadd.f32 %v1147_v29, %v2277_v61  ;;  %v1112_v7 = vpop.f32.mrf.mxu0  ;;  %v1216_v51 = vmax.f32 %v1075_v17, 0.0  ;;  %v1230_v42 = vmax.f32 %v1039_v54, 0.0  ;;  %v1077_v29 = vadd.f32 %v2263_v45, %v2271_v56 }
 0x120   :  { %v1273_v62 = vmax.f32 %v2195_v6, %v1257_v57  ;;  %v1275_v3 = vmax.f32 %v2201_v11, %v1259_v63  ;;  %v1200_v6 = vmax.f32 %v1072_v23, 0.0  ;;  %1290 = vst [vmem:[#allocation8 + $0x20] sm:$0xff] %v1274_v26  ;;  %v1113_v44 = vadd.f32 %v1112_v7, %v2261_v22 }
 0x121   :  { %v1166_v28 = vpop.f32.mrf.mxu3  ;;  %v1204_v31 = vmax.f32 %v1148_v27, 0.0  ;;  %v1131_v8 = vpop.f32.mrf.mxu1  ;;  %v1217_v59 = vmax.f32 %v1094_v20, 0.0 }
 0x122   :  { %1289 = vst [vmem:[#allocation8 + $0x18] sm:$0xff] %v1273_v62  ;;  %v1167_v19 = vadd.f32 %v1166_v28, %v2279_v0  ;;  %v1132_v12 = vadd.f32 %v1131_v8, %v2265_v48  ;;  %v1218_v34 = vmax.f32 %v1113_v44, 0.0 }
 0x123   :  { %1291 = vst [vmem:[#allocation8 + $0x28] sm:$0xff] %v1275_v3  ;;  %v1260_v14 = vmax.f32 %v1200_v6, %v1204_v31 }
 0x124   :  { %v1205_v9 = vmax.f32 %v1167_v19, 0.0  ;;  %v1219_v11 = vmax.f32 %v1132_v12, 0.0  ;;  %v1262_v33 = vmax.f32 %v1214_v13, %v1218_v34 }
 0x125   :  { %v1276_v18 = vmax.f32 %v2209_v40, %v1260_v14  ;;  %v1058_v40 = vadd.f32 %v2255_v38, %v2259_v41 }
 0x126   :  { %v1261_v16 = vmax.f32 %v1201_v10, %v1205_v9  ;;  %v1263_v49 = vmax.f32 %v1215_v15, %v1219_v11  ;;  %v1150_v52 = vpop.f32.mrf.mxu2  ;;  %v1278_v55 = vmax.f32 %v2215_v46, %v1262_v33 }
 0x127   :  { %1292 = vst [vmem:[#allocation8 + $0x30] sm:$0xff] %v1276_v18  ;;  %v1151_v25 = vadd.f32 %v1150_v52, %v2277_v61  ;;  %v1231_v41 = vmax.f32 %v1058_v40, 0.0 }
 0x128   :  { %v1277_v39 = vmax.f32 %v2211_v43, %v1261_v16  ;;  %v1279_v47 = vmax.f32 %v2219_v50, %v1263_v49  ;;  %v1114_v43 = vpop.f32.mrf.mxu0  ;;  %1294 = vst [vmem:[#allocation8 + $0x40] sm:$0xff] %v1278_v55 }
 0x129   :  { %v1169_v57 = vpop.f32.mrf.mxu3  ;;  %v1220_v23 = vmax.f32 %v1151_v25, 0.0  ;;  %v1115_v37 = vadd.f32 %v1114_v43, %v2261_v22  ;;  %v1133_v21 = vpop.f32.mrf.mxu1  ;;  %v1096_v22 = vadd.f32 %v2268_v53, %v2274_v58 }
 0x12a   :  { %1293 = vst [vmem:[#allocation8 + $0x38] sm:$0xff] %v1277_v39  ;;  %v1170_v35 = vadd.f32 %v1169_v57, %v2279_v0  ;;  %v1134_v60 = vadd.f32 %v1133_v21, %v2265_v48 }
 0x12b   :  { %1295 = vst [vmem:[#allocation8 + $0x48] sm:$0xff] %v1279_v47  ;;  %v1264_v62 = vmax.f32 %v1216_v51, %v1220_v23  ;;  %v1234_v38 = vmax.f32 %v1115_v37, 0.0  ;;  %v1233_v6 = vmax.f32 %v1096_v22, 0.0 }
 0x12c   :  { %v1221_v46 = vmax.f32 %v1170_v35, 0.0  ;;  %v1235_v50 = vmax.f32 %v1134_v60, 0.0 }
 0x12d   :  { %v1280_v1 = vmax.f32 %v2229_v24, %v1264_v62  ;;  %v1266_v26 = vmax.f32 %v1230_v42, %v1234_v38  ;;  %v1232_v24 = vmax.f32 %v1077_v29, 0.0 }
 0x12e   :  { %v1265_v63 = vmax.f32 %v1217_v59, %v1221_v46  ;;  %v1267_v28 = vmax.f32 %v1231_v41, %v1235_v50  ;;  %v1152_v32 = vpop.f32.mrf.mxu2 }
 0x12f   :  { %1296 = vst [vmem:[#allocation8 + $0x50] sm:$0xff] %v1280_v1  ;;  %v1282_v48 = vmax.f32 %v2235_v4, %v1266_v26  ;;  %v1153_v3 = vadd.f32 %v1152_v32, %v2277_v61 }
 0x130   :  { %v1281_v27 = vmax.f32 %v2231_v2, %v1265_v63  ;;  %v1283_v7 = vmax.f32 %v2239_v5, %v1267_v28 }
 0x131   :  { %v1171_v19 = vpop.f32.mrf.mxu3  ;;  %1298 = vst [vmem:[#allocation8 + $0x60] sm:$0xff] %v1282_v48  ;;  %v1236_v56 = vmax.f32 %v1153_v3, 0.0 }
 0x132   :  { %1297 = vst [vmem:[#allocation8 + $0x58] sm:$0xff] %v1281_v27  ;;  %v1172_v45 = vadd.f32 %v1171_v19, %v2279_v0 }
 0x133   :  { %1299 = vst [vmem:[#allocation8 + $0x68] sm:$0xff] %v1283_v7  ;;  %v1268_v2 = vmax.f32 %v1232_v24, %v1236_v56 }
 0x134   :  { %v1237_v53 = vmax.f32 %v1172_v45, 0.0 }
 0x135   :  { %v1284_v58 = vmax.f32 %v2243_v30, %v1268_v2 }
 0x136   :  { %v1269_v4 = vmax.f32 %v1233_v6, %v1237_v53 }
 0x137   :  { %1300 = vst [vmem:[#allocation8 + $0x70] sm:$0xff] %v1284_v58 }
 0x138   :  { %v1285_v5 = vmax.f32 %v2245_v36, %v1269_v4 }
 0x13a   :  { %1301 = vst [vmem:[#allocation8 + $0x78] sm:$0xff] %v1285_v5 }
 0x13b   :  { %1314 = dma.vmem_to_hbm [thread:$0]  %s1307_s2, 2048, %s1309_s5, [#allocation4], %s2082_s6, %s2082_s6, %s2083_s7  }
 0x13c   :  { %2072 = dma.done.wait [#allocation4], 2048  }
 0x13d   :  { %2073 = vsyncadd [#allocation4], 4294965248 }
 0x13e   :  { %1319 = vsyncpa [#allocation3], 1 }
 0x13f   :  { %1320 = vsyncpa [#allocation6], 1 }
 0x140   :  { %1321 = vsyncpa [#allocation4], 1 }

</bundles_post_ra>
